<compile_context>
chip_gen: v7x
topology: tpu7x:2x2x1
jax: 0.10.0
libtpu: 0.0.40
codegen_flags: <defaults>
</compile_context>

<pallas_src>
import functools

import jax
import jax.numpy as jnp
from jax.experimental import pallas as pl
from jax.experimental.pallas import tpu as pltpu


def _bias_bn_kernel(x_ref, bias_ref, o_ref, *, eps):
    # x_ref:    (N, tc, HW)   one channel tile, full batch + spatial (reduction axes resident)
    # bias_ref: (1, tc, 1)
    # o_ref:    (N, tc, HW)
    x = x_ref[...].astype(jnp.float32)
    n_red = x.shape[0] * x.shape[2]  # N * H * W elements per channel

    # Single sweep: sum and sum-of-squares per channel.
    s = jnp.sum(x, axis=(0, 2), keepdims=True)        # (1, tc, 1)
    ss = jnp.sum(x * x, axis=(0, 2), keepdims=True)   # (1, tc, 1)
    mean = s / n_red
    # Biased variance (PyTorch training-mode BatchNorm); clamp to avoid tiny negatives
    # from cancellation before rsqrt.
    var = jnp.maximum(ss / n_red - mean * mean, 0.0)
    inv_std = jax.lax.rsqrt(var + eps)

    # Fold bias into the affine: y = x * inv_std + (bias - mean * inv_std)
    shift = bias_ref[...].astype(jnp.float32) - mean * inv_std
    o_ref[...] = (x * inv_std + shift).astype(o_ref.dtype)


def _pick_channel_tile(C, N, HW, itemsize, budget_bytes=2 * 1024 * 1024):
    """Largest channel tile tc such that tc | C, tc is a multiple of 8 (f32 sublane)
    or tc == C (full-dim rule), and the (N, tc, HW) block fits the per-block budget."""
    candidates = sorted(
        {c for c in range(1, C + 1) if C % c == 0 and (c % 8 == 0 or c == C)},
        reverse=True,
    )
    for c in candidates:
        if N * c * HW * itemsize <= budget_bytes:
            return c
    # TODO(synk): add a two-pass (sum/sumsq accumulate over an M-tiled grid, then normalize)
    # fallback when even the smallest full-reduction slab exceeds the VMEM budget.
    return candidates[-1]


def bias_batch_norm_2d(x, bias, eps=1e-5):
    """x: (N, C, H, W), bias: (1, C, 1, 1). Returns (N, C, H, W).

    Equivalent to nn.BatchNorm2d(C, affine=False)(x) + bias in training mode
    (batch statistics, biased variance). Running-stat updates are not modeled
    (they do not affect the forward output).
    """
    N, C, H, W = x.shape
    HW = H * W
    x3 = x.reshape(N, C, HW)          # free view, no transpose / no extra HBM traffic
    bias3 = bias.reshape(1, C, 1)

    itemsize = jnp.dtype(x.dtype).itemsize
    tc = _pick_channel_tile(C, N, HW, itemsize)
    num_tiles = C // tc

    kernel = functools.partial(_bias_bn_kernel, eps=eps)

    out3 = pl.pallas_call(
        kernel,
        out_shape=jax.ShapeDtypeStruct((N, C, HW), x.dtype),
        grid_spec=pl.GridSpec(
            grid=(num_tiles,),
            in_specs=[
                pl.BlockSpec((N, tc, HW), lambda i: (0, i, 0)),
                pl.BlockSpec((1, tc, 1), lambda i: (0, i, 0)),
            ],
            out_specs=pl.BlockSpec((N, tc, HW), lambda i: (0, i, 0)),
        ),
        compiler_params=pltpu.CompilerParams(
            # Channel tiles are independent -> shard across TensorCores on v7x.
            dimension_semantics=("parallel",),
            vmem_limit_bytes=32 * 1024 * 1024,
        ),
    )(x3, bias3)

    return out3.reshape(N, C, H, W)   # free view back to NCHW


if __name__ == "__main__":
    key = jax.random.PRNGKey(0)
    N, C, H, W = 2, 4, 16, 16
    x = jax.random.normal(key, (N, C, H, W), dtype=jnp.float32)

    # Parameters per module __init__: bias shape (1, C, 1, 1), zero-initialized
    # (self.bias.data.zero_()). BatchNorm2d(affine=False) has no weight/bias.
    bias = jnp.zeros((1, C, 1, 1), dtype=jnp.float32)

    out = bias_batch_norm_2d(x, bias, eps=1e-5)
    out = jax.block_until_ready(out)

    # Pure-JAX reference (training-mode batch norm over (N, H, W) per channel).
    mean = jnp.mean(x, axis=(0, 2, 3), keepdims=True)
    var = jnp.mean((x - mean) ** 2, axis=(0, 2, 3), keepdims=True)
    ref = (x - mean) / jnp.sqrt(var + 1e-5) + bias
    assert jnp.allclose(out, ref, atol=1e-5, rtol=1e-5), "mismatch vs reference"

    print("KERNEL_OK")
</pallas_src>

<mosaic_0001>
module attributes {stable_mosaic.version = 11 : i64} {
  func.func @_bias_bn_kernel(%arg0: i32, %arg1: memref<2x4x256xf32, #tpu.memory_space<vmem>>, %arg2: memref<1x4x1xf32, #tpu.memory_space<vmem>>, %arg3: memref<2x4x256xf32, #tpu.memory_space<vmem>>) attributes {dimension_semantics = [#tpu.dimension_semantics<parallel>], iteration_bounds = array<i64: 1>, scalar_prefetch = 0 : i64, scratch_operands = 0 : i64, tpu.core_type = #tpu.core_type<tc>, window_params = [{transform_indices = @transform_0, window_bounds = array<i64: 2, 4, 256>}, {transform_indices = @transform_1, window_bounds = array<i64: 1, 4, 1>}, {transform_indices = @transform_2, window_bounds = array<i64: 2, 4, 256>}]} {
    %c0 = arith.constant 0 : index
    %c0_0 = arith.constant 0 : index
    %c0_1 = arith.constant 0 : index
    %0 = vector.load %arg1[%c0, %c0_0, %c0_1] : memref<2x4x256xf32, #tpu.memory_space<vmem>>, vector<2x4x256xf32>
    %cst = arith.constant dense<0.000000e+00> : vector<4xf32>
    %1 = vector.multi_reduction <add>, %0, %cst [0, 2] : vector<2x4x256xf32> to vector<4xf32>
    %2 = vector.shape_cast %1 : vector<4xf32> to vector<1x4x1xf32>
    %3 = arith.mulf %0, %0 : vector<2x4x256xf32>
    %cst_2 = arith.constant dense<0.000000e+00> : vector<4xf32>
    %4 = vector.multi_reduction <add>, %3, %cst_2 [0, 2] : vector<2x4x256xf32> to vector<4xf32>
    %5 = vector.shape_cast %4 : vector<4xf32> to vector<1x4x1xf32>
    %cst_3 = arith.constant 5.120000e+02 : f32
    %6 = vector.broadcast %cst_3 : f32 to vector<1x4x1xf32>
    %7 = arith.divf %2, %6 : vector<1x4x1xf32>
    %cst_4 = arith.constant 5.120000e+02 : f32
    %8 = vector.broadcast %cst_4 : f32 to vector<1x4x1xf32>
    %9 = arith.divf %5, %8 : vector<1x4x1xf32>
    %10 = arith.mulf %7, %7 : vector<1x4x1xf32>
    %11 = arith.subf %9, %10 : vector<1x4x1xf32>
    %cst_5 = arith.constant 0.000000e+00 : f32
    %12 = vector.broadcast %cst_5 : f32 to vector<1x4x1xf32>
    %13 = arith.maximumf %11, %12 : vector<1x4x1xf32>
    %cst_6 = arith.constant 9.99999974E-6 : f32
    %14 = vector.broadcast %cst_6 : f32 to vector<1x4x1xf32>
    %15 = arith.addf %13, %14 : vector<1x4x1xf32>
    %16 = math.rsqrt %15 : vector<1x4x1xf32>
    %c0_7 = arith.constant 0 : index
    %c0_8 = arith.constant 0 : index
    %c0_9 = arith.constant 0 : index
    %17 = vector.load %arg2[%c0_7, %c0_8, %c0_9] : memref<1x4x1xf32, #tpu.memory_space<vmem>>, vector<1x4x1xf32>
    %18 = arith.mulf %7, %16 : vector<1x4x1xf32>
    %19 = arith.subf %17, %18 : vector<1x4x1xf32>
    %20 = vector.broadcast %16 : vector<1x4x1xf32> to vector<2x4x256xf32>
    %21 = arith.mulf %0, %20 : vector<2x4x256xf32>
    %22 = vector.broadcast %19 : vector<1x4x1xf32> to vector<2x4x256xf32>
    %23 = arith.addf %21, %22 : vector<2x4x256xf32>
    %c0_10 = arith.constant 0 : index
    %c0_11 = arith.constant 0 : index
    %c0_12 = arith.constant 0 : index
    %24 = vector.load %arg3[%c0_10, %c0_11, %c0_12] : memref<2x4x256xf32, #tpu.memory_space<vmem>>, vector<2x4x256xf32>
    tpu.vector_store %arg3[%c0_10, %c0_11, %c0_12], %23 {strides = array<i32>} : memref<2x4x256xf32, #tpu.memory_space<vmem>>, vector<2x4x256xf32>,
    return
  }
  func.func @transform_0(%arg0: i32) -> (i32, i32, i32) {
    %c0_i32 = arith.constant 0 : i32
    %c0_i32_0 = arith.constant 0 : i32
    %c0_i32_1 = arith.constant 0 : i32
    return %c0_i32, %arg0, %c0_i32_0 : i32, i32, i32
  }
  func.func @transform_1(%arg0: i32) -> (i32, i32, i32) {
    %c0_i32 = arith.constant 0 : i32
    %c0_i32_0 = arith.constant 0 : i32
    %c0_i32_1 = arith.constant 0 : i32
    return %c0_i32, %arg0, %c0_i32_0 : i32, i32, i32
  }
  func.func @transform_2(%arg0: i32) -> (i32, i32, i32) {
    %c0_i32 = arith.constant 0 : i32
    %c0_i32_0 = arith.constant 0 : i32
    %c0_i32_1 = arith.constant 0 : i32
    return %c0_i32, %arg0, %c0_i32_0 : i32, i32, i32
  }
}

</mosaic_0001>

<bundles_post_ra>
// kernel: tpu_custom_call.1
= control target key start
LH: loop header
LB: loop body
LE: loop exit
PB: predicated region body
PF: predicated region fallthrough
CT: control target
= control target key end

     0   :  { %7 = vsyncpa [#allocation3], 0  ;;  %s238_s0 = inlined_call_operand.hbm [shape: f32[2,4,256], index: 0, kind: input, shape index: {}]   ;;  %s239_s1 = inlined_call_operand.vmem [shape: f32[1,4,1], index: 1, kind: input, shape index: {}]   ;;  %s240_s2 = inlined_call_operand.hbm [shape: f32[2,4,256], index: 2, kind: output, shape index: {}]  }
   0x1   :  { %8 = vsyncpa [#allocation4], 0  ;;  %s176_s9 = smov [#allocation2]   ;;  %s128_s13 = scalar_lea.hbm %s238_s0, 256 }
   0x2   :  { %s14_s10 = sshll.u32 %s176_s9, 4  ;;  %p129_p0 = scmp.ne.s32.totalorder %s238_s0, %s128_s13  ;;  %s15_s10 = int_to_ptr.vmem [resolvable:$true] %s14_s10 }
   0x3   :  { %p132_p1 = scmp.lt.u32.totalorder %s128_s13, %s238_s0 }
   0x5   :  { %p134_p2 = pnand %p132_p1, %p129_p0 }
   0x7   :  { %137 = shalt.err (!%p134_p2)
}
   0x8   :  { %s138_s18 = scalar_lea.vmem %s15_s10, 256  ;;  %p143_p4 = scmp.lt.s32.totalorder %s15_s10, %s15_s10 }
   0x9   :  { %p139_p3 = scmp.ne.s32.totalorder %s15_s10, %s138_s18  ;;  %p144_p5 = scmp.lt.s32.totalorder %s138_s18, %s138_s18 }
   0xb   :  { %p145_p6 = por %p144_p5, %p143_p4 }
   0xd   :  { %p146_p7 = pnand %p145_p6, %p139_p3 }
   0xf   :  { %149 = shalt.err (!%p146_p7)
}
  0x10   :  { %s177_s19 = smov 128   ;;  %s178_s20 = smov 8  }
  0x11   :  { %20 = dma.hbm_to_vmem [thread:$0]  %s238_s0, 256, %s15_s10, [#allocation3], %s177_s19, %s177_s19, %s178_s20  }
  0x12   :  { %172 = dma.done.wait [#allocation3], 256  }
  0x13   :  { %173 = vsyncadd [#allocation3], 4294967040  ;;  %vm34_vm0 = vcmask 1043456   ;;  %v26_v0 = vld [vmem:[#allocation2] sm:$0xff]  ;;  %v27_v1 = vld [vmem:[#allocation2 + $0x8] sm:$0xff]  ;;  %v179_v22 = vmov 0   ;;  %v76_v37 = vlaneseq }
  0x14   :  { %v30_v2 = vcombine.high %v26_v0, %v26_v0  ;;  %v31_v3 = vcombine.high %v27_v1, %v27_v1  ;;  %v35_v4 = vsel %vm34_vm0, %v26_v0, 0.0  ;;  %v44_v5 = vmul.f32 %v26_v0, %v26_v0  ;;  %122 = vset.pattern.permute.xlu1 %v179_v22  ;;  %123 = vset.pattern.permute.xlu0 %v179_v22  ;;  %v69_v32 = vld [vmem:[%s239_s1] sm:$0xf]  ;;  %s181_s24 = smov [#allocation5]  }
  0x15   :  { %v45_v6 = vmul.f32 %v27_v1, %v27_v1  ;;  %v38_v8 = vsel %vm34_vm0, %v27_v1, 0.0  ;;  %v180_v35 = vmov 839922192   ;;  %v77_v39 = vshrl.u32 %v76_v37, 7  ;;  %s104_s25 = sshll.u32 %s181_s24, 4  ;;  %s105_s25 = int_to_ptr.vmem [resolvable:$true] %s104_s25 }
  0x16   :  { %v36_v7 = vsel %vm34_vm0, %v30_v2, 0.0  ;;  %v48_v10 = vcombine.high %v44_v5, %v44_v5  ;;  %v52_v12 = vsel %vm34_vm0, %v44_v5, 0.0  ;;  %v40_v13 = vsel %vm34_vm0, %v31_v3, 0.0  ;;  %s150_s1 = scalar_lea.vmem %s105_s25, 256  ;;  %p155_p9 = scmp.lt.s32.totalorder %s105_s25, %s105_s25 }
  0x17   :  { %v37_v9 = vadd.f32 %v36_v7, %v35_v4  ;;  %v49_v11 = vcombine.high %v45_v6, %v45_v6  ;;  %v55_v16 = vsel %vm34_vm0, %v45_v6, 0.0  ;;  %v74_v36 = vunpack.c.l.s4 %v180_v35  ;;  %p151_p8 = scmp.ne.s32.totalorder %s105_s25, %s150_s1  ;;  %p156_p10 = scmp.lt.s32.totalorder %s150_s1, %s150_s1 }
  0x18   :  { %v53_v15 = vsel %vm34_vm0, %v48_v10, 0.0 }
  0x19   :  { %v39_v14 = vadd.f32 %v38_v8, %v37_v9  ;;  %v54_v17 = vadd.f32 %v53_v15, %v52_v12  ;;  %v57_v19 = vsel %vm34_vm0, %v49_v11, 0.0  ;;  %v75_v38 = vunpack.c.0.s8 %v74_v36  ;;  %p157_p11 = por %p156_p10, %p155_p9 }
  0x1b   :  { %v41_v18 = vadd.f32 %v40_v13, %v39_v14  ;;  %v56_v20 = vadd.f32 %v55_v16, %v54_v17  ;;  %v78_v40 = vsub.s32 %v75_v38, %v77_v39  ;;  %p158_p12 = pnand %p157_p11, %p151_p8 }
  0x1d   :  { %42 = vadd.xlane.f32.xlu0 %v41_v18  ;;  %v58_v21 = vadd.f32 %v57_v19, %v56_v20 }
  0x21   :  { %59 = vadd.xlane.f32.xlu0 %v58_v21 }
  0xaa   :  { %v43_v23 = vpop.xlane.xlu0 %42 }
  0xab   :  { %v62_v24 = vmul.f32 0.001953125, %v43_v23 }
  0xad   :  { %v64_v26 = vmul.f32 %v62_v24, %v62_v24 }
  0xae   :  { %v60_v25 = vpop.xlane.xlu0 %59 }
  0xaf   :  { %v63_v27 = vmul.f32 0.001953125, %v60_v25 }
  0xb1   :  { %v65_v28 = vsub.f32 %v63_v27, %v64_v26 }
  0xb3   :  { %v66_v29 = vmax.f32 %v65_v28, 0.0 }
  0xb5   :  { %v67_v30 = vadd.f32 1e-05, %v66_v29 }
  0xb7   :  { %126 = vrsqrt.f32 %v67_v30 }
  0xc1   :  { %v127_v31 = vpop.eup %126 }
  0xc2   :  { %v70_v33 = vmul.f32 %v127_v31, %v62_v24  ;;  %v79_v41 = vrot.slane %v127_v31, %v78_v40 }
  0xc4   :  { %v71_v34 = vsub.f32 %v69_v32, %v70_v33  ;;  %v81_v43 = vmul.f32 %v79_v41, %v26_v0  ;;  %v82_v44 = vmul.f32 %v79_v41, %v27_v1 }
  0xc6   :  { %85 = vperm.xlu1 %122, %v71_v34  }
 0x145   :  { %v86_v42 = vpop.permute.xlu1 %85 }
 0x146   :  { %v93_v45 = vrot.slane %v86_v42, %v78_v40 }
 0x148   :  { %v95_v46 = vadd.f32 %v93_v45, %v81_v43  ;;  %v96_v47 = vadd.f32 %v93_v45, %v82_v44 }
 0x14a   :  { %97 = vst [vmem:[#allocation5] sm:$0xff] %v95_v46  ;;  %98 = vst [vmem:[#allocation5 + $0x8] sm:$0xff] %v96_v47 }
 0x14b   :  { %161 = shalt.err (!%p158_p12)
}
 0x14c   :  { %s162_s28 = scalar_lea.hbm %s240_s2, 256 }
 0x14d   :  { %p163_p13 = scmp.ne.s32.totalorder %s240_s2, %s162_s28  ;;  %p166_p0 = scmp.lt.u32.totalorder %s162_s28, %s240_s2 }
 0x14f   :  { %p168_p1 = pnand %p166_p0, %p163_p13 }
 0x151   :  { %171 = shalt.err (!%p168_p1)
}
 0x152   :  { %110 = dma.vmem_to_hbm [thread:$0]  %s105_s25, 256, %s240_s2, [#allocation4], %s177_s19, %s177_s19, %s178_s20  }
 0x153   :  { %174 = dma.done.wait [#allocation4], 256  }
 0x154   :  { %175 = vsyncadd [#allocation4], 4294967040 }
 0x155   :  { %114 = vsyncpa [#allocation3], 1 }
 0x156   :  { %115 = vsyncpa [#allocation4], 1 }

</bundles_post_ra>
